<compile_context>
chip_gen: v7x
topology: tpu7x:2x2x1
jax: 0.10.0
libtpu: 0.0.40
codegen_flags: <defaults>
</compile_context>

<pallas_src>
import jax
import jax.numpy as jnp
from jax.experimental import pallas as pl
from jax.experimental.pallas import tpu as pltpu


def _prod(xs):
    p = 1
    for v in xs:
        p *= int(v)
    return p


def _resolve_size(in_shape, size):
    """Mimic torch.Tensor.view size resolution (at most one -1)."""
    total = _prod(in_shape)
    if size is None:
        batch = int(in_shape[0]) if len(in_shape) > 0 else 1
        rest = _prod(in_shape[1:]) if batch == 0 else total // batch
        return (batch, rest)
    size = tuple(int(s) for s in size)
    n_infer = sum(1 for s in size if s == -1)
    if n_infer > 1:
        raise ValueError("only one dimension can be inferred (-1)")
    if n_infer == 1:
        known = _prod(s for s in size if s != -1)
        if known == 0 or total % known != 0:
            raise ValueError(f"cannot view shape {in_shape} as {size}")
        size = tuple(total // known if s == -1 else s for s in size)
    if _prod(size) != total:
        raise ValueError(f"cannot view shape {in_shape} as {size}")
    return size


def _make_dma_copy_kernel(row_chunks):
    """Kernel body: issue one HBM->HBM DMA per static row chunk (all started
    before any wait, so they stay in flight together), then wait on all.
    row_chunks=None means a single full-ref copy."""

    def kernel(x_hbm, o_hbm, sems):
        if row_chunks is None:
            cp = pltpu.make_async_copy(x_hbm, o_hbm, sems.at[0])
            cp.start()
            cp.wait()
            return
        copies = []
        for idx, (r0, nr) in enumerate(row_chunks):
            cp = pltpu.make_async_copy(
                x_hbm.at[pl.ds(r0, nr)],
                o_hbm.at[pl.ds(r0, nr)],
                sems.at[idx],
            )
            cp.start()
            copies.append(cp)
        for cp in copies:
            cp.wait()

    return kernel


# Lane-dense flat widths tried largest-first (all multiples of 128) — gives a
# wide 2-D view whose row ranges are large contiguous spans for the DMAs.
_LANE_CANDIDATES = (32768, 16384, 8192, 4096, 2048, 1024, 512, 256, 128)
# Target bytes per in-flight DMA and max concurrent DMAs.
_CHUNK_TARGET_BYTES = 32 * 1024 * 1024
_MAX_INFLIGHT = 4


def pallas_reshape(x, size=None):
    """Pallas equivalent of Reshape(size).forward(x)."""
    out_shape = _resolve_size(x.shape, size)
    total = int(x.size)
    if total == 0:
        return jnp.reshape(x, out_shape)  # nothing to copy

    itemsize = jnp.dtype(x.dtype).itemsize
    total_bytes = total * itemsize

    # Pick a wide 2-D flat view (m, n) when the element count permits; the
    # copy is chunked along rows.  Otherwise copy the whole buffer at once in
    # the output's own (metadata-only reshaped) shape.
    n = next((c for c in _LANE_CANDIDATES if total % c == 0), None)
    copy_shape = (total // n, n) if n is not None else out_shape
    m = copy_shape[0]

    if n is None or m < 2:
        row_chunks = None  # single full-ref DMA
        n_sems = 1
    else:
        # 2..4 DMAs in flight, each targeting ~32 MiB.
        nc = max(2, min(_MAX_INFLIGHT, -(-total_bytes // _CHUNK_TARGET_BYTES)))
        nc = min(nc, m)
        step = -(-m // nc)
        if step >= 8:
            step = -(-step // 8) * 8  # align chunk starts to sublane tiles
        row_chunks, r = [], 0
        while r < m:
            nr = min(step, m - r)
            row_chunks.append((r, nr))
            r += nr
        n_sems = len(row_chunks)

    x2 = jnp.reshape(x, copy_shape)  # metadata-only flatten in the wrapper

    flat = pl.pallas_call(
        _make_dma_copy_kernel(row_chunks),
        out_shape=jax.ShapeDtypeStruct(copy_shape, x.dtype),
        in_specs=[pl.BlockSpec(memory_space=pl.ANY)],
        out_specs=pl.BlockSpec(memory_space=pl.ANY),
        scratch_shapes=[pltpu.SemaphoreType.DMA((n_sems,))],
        cost_estimate=pl.CostEstimate(
            flops=0,
            transcendentals=0,
            bytes_accessed=2 * total_bytes,
        ),
    )(x2)

    return jnp.reshape(flat, out_shape)  # metadata-only un-flatten


if __name__ == "__main__":
    key = jax.random.PRNGKey(0)
    # Small NCHW input consistent with a conv-style feature map.
    B, C, H, W = 2, 4, 16, 16
    x = jax.random.normal(key, (B, C, H, W), dtype=jnp.float32)

    # Case 1: size=None -> flatten all dims except batch.
    y = jax.block_until_ready(pallas_reshape(x, size=None))
    assert y.shape == (B, C * H * W)
    assert jnp.array_equal(y, x.reshape(B, -1))

    # Case 2: explicit size (with a -1), like Reshape((B, C, -1)).
    y2 = jax.block_until_ready(pallas_reshape(x, size=(B, C, -1)))
    assert y2.shape == (B, C, H * W)
    assert jnp.array_equal(y2, x.reshape(B, C, -1))

    # Case 3: a larger tensor that exercises the multi-DMA (2 in flight) path.
    x3 = jax.random.normal(jax.random.PRNGKey(1), (8, 16, 32, 32),
                           dtype=jnp.float32)
    y3 = jax.block_until_ready(pallas_reshape(x3, size=None))
    assert y3.shape == (8, 16 * 32 * 32)
    assert jnp.array_equal(y3, x3.reshape(8, -1))

    # Case 4: odd element count (not divisible by 128) -> single full-ref DMA.
    x4 = jax.random.normal(jax.random.PRNGKey(2), (3, 5, 7), dtype=jnp.float32)
    y4 = jax.block_until_ready(pallas_reshape(x4, size=None))
    assert y4.shape == (3, 35)
    assert jnp.array_equal(y4, x4.reshape(3, -1))

    print("KERNEL_OK")
</pallas_src>

<mosaic_0001>
module attributes {stable_mosaic.version = 11 : i64} {
  func.func @kernel(%arg0: memref<1x2048xf32, #tpu.memory_space<any>>, %arg1: memref<1x2048xf32, #tpu.memory_space<any>>, %arg2: memref<1x!tpu.dma_semaphore, #tpu.memory_space<semaphore_mem>>) attributes {dimension_semantics = [], scalar_prefetch = 0 : i64, scratch_operands = 1 : i64, tpu.core_type = #tpu.core_type<tc>} {
    %c0_i32 = arith.constant 0 : i32
    %0 = tpu.memref_slice %arg2[%c0_i32] : memref<1x!tpu.dma_semaphore, #tpu.memory_space<semaphore_mem>> -> memref<1x!tpu.dma_semaphore, #tpu.memory_space<semaphore_mem>>
    %1 = tpu.memref_squeeze %0 : memref<1x!tpu.dma_semaphore, #tpu.memory_space<semaphore_mem>> -> memref<!tpu.dma_semaphore, #tpu.memory_space<semaphore_mem>>
    tpu.enqueue_dma source(%arg0 : memref<1x2048xf32, #tpu.memory_space<any>>) target(%arg1 : memref<1x2048xf32, #tpu.memory_space<any>>) target_semaphore(%1 : memref<!tpu.dma_semaphore, #tpu.memory_space<semaphore_mem>>)
    %c0_i32_0 = arith.constant 0 : i32
    %2 = tpu.memref_slice %arg2[%c0_i32_0] : memref<1x!tpu.dma_semaphore, #tpu.memory_space<semaphore_mem>> -> memref<1x!tpu.dma_semaphore, #tpu.memory_space<semaphore_mem>>
    %3 = tpu.memref_squeeze %2 : memref<1x!tpu.dma_semaphore, #tpu.memory_space<semaphore_mem>> -> memref<!tpu.dma_semaphore, #tpu.memory_space<semaphore_mem>>
    tpu.wait_dma2 semaphore(%3 : memref<!tpu.dma_semaphore, #tpu.memory_space<semaphore_mem>>) src(%arg0 : memref<1x2048xf32, #tpu.memory_space<any>>) dst(%arg1 : memref<1x2048xf32, #tpu.memory_space<any>>)
    return
  }
}

</mosaic_0001>

<bundles_post_ra>
// kernel: tpu_custom_call.1
= control target key start
LH: loop header
LB: loop body
LE: loop exit
PB: predicated region body
PF: predicated region fallthrough
CT: control target
= control target key end

     0   :  { %s34_s6 = smov [#allocation2]   ;;  %s35_s7 = smov [#allocation3]   ;;  %s53_s0 = inlined_call_operand.hbm [shape: f32[1,2048], index: 0, kind: input, shape index: {}]   ;;  %s54_s1 = inlined_call_operand.hbm [shape: f32[1,2048], index: 1, kind: output, shape index: {}]  }
   0x1   :  { %s36_s8 = smov 0  }
   0x2   :  { %18 = dma.general %s53_s0, 256, %s54_s1, %s34_s6, %s35_s7, [#allocation4], %s36_s8, 0  }
   0x3   :  { %32 = dma.done.wait [#allocation2], 256 }
   0x4   :  { %33 = vsyncadd [#allocation2], 4294967040 }
   0x5   :  { %22 = vsyncmov [#allocation2] }
   0x8   :  { %s23_s13 = vpop.sfrf %22 }
   0x9   :  { %p28_p0 = scmp.ne.s32.totalorder %s23_s13, 0 }
   0xb   :  { %27 = shalt.err (%p28_p0)  }

</bundles_post_ra>
